<compile_context>
chip_gen: v7x
topology: tpu7x:2x2x1
jax: 0.10.0
libtpu: 0.0.40
codegen_flags: <defaults>
</compile_context>

<pallas_src>
import functools

import jax
import jax.numpy as jnp
from jax.experimental import pallas as pl
from jax.experimental.pallas import tpu as pltpu

_NEG = jnp.float32(-1e30)  # "masked logit" value for padded action lanes


def mlp_softmax_kernel(x_ref, w1_ref, b1_ref, w2_ref, b2_ref, w3_ref, b3_ref,
                       o_ref, *, n_actions):
    # Layer 1: Linear + ReLU. bf16 operands, f32 accumulate, f32 elementwise.
    h = jnp.dot(x_ref[...], w1_ref[...],
                preferred_element_type=jnp.float32) + b1_ref[...]
    h = jnp.maximum(h, 0.0).astype(jnp.bfloat16)
    # Layer 2: Linear + ReLU.
    h = jnp.dot(h, w2_ref[...],
                preferred_element_type=jnp.float32) + b2_ref[...]
    h = jnp.maximum(h, 0.0).astype(jnp.bfloat16)
    # Layer 3 (last): Linear + identity.  Action dim is padded to 128 lanes
    # (zero bf16 weight columns); padded lanes carry a -1e30 f32 bias so they
    # underflow to exactly 0 in the softmax below.
    logits = jnp.dot(h, w3_ref[...],
                     preferred_element_type=jnp.float32) + b3_ref[...]
    # Numerically stable softmax over the (lane-padded) action dimension.
    m = jnp.max(logits, axis=-1, keepdims=True)
    e = jnp.exp(logits - m)
    denom = jnp.sum(e, axis=-1, keepdims=True)
    # EUP reciprocal + one Newton step -> near-exact normalization, VPU-free divide.
    r = pl.reciprocal(denom, approx=True)
    r = r * (2.0 - denom * r)
    # Store only the real action lanes (output block == full last dim of out).
    o_ref[...] = (e[:, :n_actions] * r).astype(o_ref.dtype)


def _round_up(v, m):
    return ((v + m - 1) // m) * m


def _pad2(a, rows, cols, value=0.0):
    r, c = a.shape
    return jnp.pad(a, ((0, rows - r), (0, cols - c)), constant_values=value)


@functools.partial(jax.jit, static_argnames=("tb",))
def actor_softmax_forward(x, params, *, tb=2048):
    """x: [B, n_states] f32.  params: dict of [in,out] weights / [1,out] biases."""
    w1, b1, w2, b2, w3, b3 = (params["w1"], params["b1"], params["w2"],
                              params["b2"], params["w3"], params["b3"])
    B, n_states = x.shape
    hidden = w1.shape[1]
    n_actions = w3.shape[1]

    # Pad only the final (N-side) action dim to a full 128-lane width so the
    # in-kernel softmax runs on a lane-dense vreg.  Hidden dim left unpadded
    # (K-side zero padding would be real MXU work for nothing).
    A = _round_up(max(n_actions, 128), 128)

    # bf16 matmul operands (accumulation stays f32 in-kernel); biases stay f32
    # so the -1e30 padded-logit bias is added in f32.
    bf16 = jnp.bfloat16
    x_bf = x.astype(bf16)
    w1b = w1.astype(bf16)
    w2b = w2.astype(bf16)
    w3b = _pad2(w3, hidden, A).astype(bf16)      # extra action cols: zero weights
    b3p = _pad2(b3, 1, A, value=_NEG)            # extra action cols: -1e30 bias

    # Batch tile: multiple of 8 sublanes, large enough to amortize the
    # ~0.35us/step pipeline overhead, but clamped so there are always >=2 grid
    # steps (megacore sharding on v7x + DMA/compute overlap).
    tb_req = max(8, (int(tb) // 8) * 8)
    tb_half = _round_up(max(pl.cdiv(B, 2), 8), 8)
    tb = min(tb_req, tb_half)
    grid = (pl.cdiv(B, tb),)

    kernel = functools.partial(mlp_softmax_kernel, n_actions=n_actions)

    out = pl.pallas_call(
        kernel,
        out_shape=jax.ShapeDtypeStruct((B, n_actions), jnp.float32),
        grid=grid,
        in_specs=[
            pl.BlockSpec((tb, n_states), lambda i: (i, 0)),        # streamed x (bf16)
            pl.BlockSpec((n_states, hidden), lambda i: (0, 0)),    # resident weights
            pl.BlockSpec((1, hidden), lambda i: (0, 0)),
            pl.BlockSpec((hidden, hidden), lambda i: (0, 0)),
            pl.BlockSpec((1, hidden), lambda i: (0, 0)),
            pl.BlockSpec((hidden, A), lambda i: (0, 0)),
            pl.BlockSpec((1, A), lambda i: (0, 0)),
        ],
        out_specs=pl.BlockSpec((tb, n_actions), lambda i: (i, 0)),  # real lanes only
        compiler_params=pltpu.CompilerParams(
            dimension_semantics=("parallel",),        # megacore on v7x
            vmem_limit_bytes=32 * 1024 * 1024,        # far from binding; fits v7x
        ),
    )(x_bf, w1b, b1, w2b, b2, w3b, b3p)

    return out


def init_params(key, n_states, hidden, n_actions):
    """Deterministic, PyTorch-Linear-like uniform init (synthetic weights)."""
    ks = jax.random.split(key, 6)

    def lin(kw, kb, in_dim, out_dim):
        bound = 1.0 / jnp.sqrt(in_dim)
        w = jax.random.uniform(kw, (in_dim, out_dim), jnp.float32,
                               -bound, bound)
        b = jax.random.uniform(kb, (1, out_dim), jnp.float32, -bound, bound)
        return w, b

    w1, b1 = lin(ks[0], ks[1], n_states, hidden)
    w2, b2 = lin(ks[2], ks[3], hidden, hidden)
    w3, b3 = lin(ks[4], ks[5], hidden, n_actions)
    return {"w1": w1, "b1": b1, "w2": w2, "b2": b2, "w3": w3, "b3": b3}


def reference_forward(x, p):
    h = jnp.maximum(x @ p["w1"] + p["b1"], 0.0)
    h = jnp.maximum(h @ p["w2"] + p["b2"], 0.0)
    logits = h @ p["w3"] + p["b3"]
    return jax.nn.softmax(logits, axis=-1)


if __name__ == "__main__":
    # ActorSoftmax config: [linear(n_states, hidden, relu),
    # linear(hidden, hidden, relu), linear(hidden, n_actions, none)] + softmax.
    n_states, hidden, n_actions, batch = 32, 64, 8, 256

    key = jax.random.PRNGKey(0)
    kx, kp = jax.random.split(key)
    x = jax.random.normal(kx, (batch, n_states), jnp.float32)
    params = init_params(kp, n_states, hidden, n_actions)

    # Default tb clamps to >=2 grid steps (here grid=(2,), tb=128): exercises
    # the batch-tiled, double-buffered, megacore path.
    out = actor_softmax_forward(x, params)
    out = jax.block_until_ready(out)

    ref = reference_forward(x, params)
    assert out.shape == (batch, n_actions)
    # Tolerance accounts for bf16 matmul operands (f32 accumulation).
    assert jnp.allclose(out, ref, atol=2e-2, rtol=2e-2), "mismatch vs reference"
    # Newton-corrected reciprocal -> rows normalize to ~f32 accuracy.
    assert jnp.allclose(jnp.sum(out, axis=-1), 1.0, atol=1e-3)

    print("KERNEL_OK")
</pallas_src>

<mosaic_0001>
module attributes {stable_mosaic.version = 11 : i64} {
  func.func @mlp_softmax_kernel(%arg0: i32, %arg1: memref<128x32xbf16, #tpu.memory_space<vmem>>, %arg2: memref<32x64xbf16, #tpu.memory_space<vmem>>, %arg3: memref<1x64xf32, #tpu.memory_space<vmem>>, %arg4: memref<64x64xbf16, #tpu.memory_space<vmem>>, %arg5: memref<1x64xf32, #tpu.memory_space<vmem>>, %arg6: memref<64x128xbf16, #tpu.memory_space<vmem>>, %arg7: memref<1x128xf32, #tpu.memory_space<vmem>>, %arg8: memref<128x8xf32, #tpu.memory_space<vmem>>) attributes {dimension_semantics = [#tpu.dimension_semantics<parallel>], iteration_bounds = array<i64: 2>, scalar_prefetch = 0 : i64, scratch_operands = 0 : i64, tpu.core_type = #tpu.core_type<tc>, window_params = [{transform_indices = @transform_0, window_bounds = array<i64: 128, 32>}, {pipeline_mode = #tpu.pipeline_mode<synchronous>, transform_indices = @transform_1, window_bounds = array<i64: 32, 64>}, {pipeline_mode = #tpu.pipeline_mode<synchronous>, transform_indices = @transform_2, window_bounds = array<i64: 1, 64>}, {pipeline_mode = #tpu.pipeline_mode<synchronous>, transform_indices = @transform_3, window_bounds = array<i64: 64, 64>}, {pipeline_mode = #tpu.pipeline_mode<synchronous>, transform_indices = @transform_4, window_bounds = array<i64: 1, 64>}, {pipeline_mode = #tpu.pipeline_mode<synchronous>, transform_indices = @transform_5, window_bounds = array<i64: 64, 128>}, {pipeline_mode = #tpu.pipeline_mode<synchronous>, transform_indices = @transform_6, window_bounds = array<i64: 1, 128>}, {transform_indices = @transform_7, window_bounds = array<i64: 128, 8>}]} {
    %c0 = arith.constant 0 : index
    %c0_0 = arith.constant 0 : index
    %0 = vector.load %arg1[%c0, %c0_0] : memref<128x32xbf16, #tpu.memory_space<vmem>>, vector<128x32xbf16>
    %c0_1 = arith.constant 0 : index
    %c0_2 = arith.constant 0 : index
    %1 = vector.load %arg2[%c0_1, %c0_2] : memref<32x64xbf16, #tpu.memory_space<vmem>>, vector<32x64xbf16>
    %cst = arith.constant dense<0.000000e+00> : vector<128x64xf32>
    %2 = tpu.matmul %0, %1, %cst {dimension_numbers = #tpu.dot_dimension_numbers<[1], [0], [0], [1], [0, 0, 1, 1], [], []>} : vector<128x32xbf16>, vector<32x64xbf16>, vector<128x64xf32> -> vector<128x64xf32>
    %c0_3 = arith.constant 0 : index
    %c0_4 = arith.constant 0 : index
    %3 = vector.load %arg3[%c0_3, %c0_4] : memref<1x64xf32, #tpu.memory_space<vmem>>, vector<1x64xf32>
    %4 = vector.broadcast %3 : vector<1x64xf32> to vector<128x64xf32>
    %5 = arith.addf %2, %4 : vector<128x64xf32>
    %cst_5 = arith.constant 0.000000e+00 : f32
    %6 = vector.broadcast %cst_5 : f32 to vector<128x64xf32>
    %7 = arith.maximumf %5, %6 : vector<128x64xf32>
    %8 = arith.truncf %7 : vector<128x64xf32> to vector<128x64xbf16>
    %c0_6 = arith.constant 0 : index
    %c0_7 = arith.constant 0 : index
    %9 = vector.load %arg4[%c0_6, %c0_7] : memref<64x64xbf16, #tpu.memory_space<vmem>>, vector<64x64xbf16>
    %cst_8 = arith.constant dense<0.000000e+00> : vector<128x64xf32>
    %10 = tpu.matmul %8, %9, %cst_8 {dimension_numbers = #tpu.dot_dimension_numbers<[1], [0], [0], [1], [0, 0, 1, 1], [], []>} : vector<128x64xbf16>, vector<64x64xbf16>, vector<128x64xf32> -> vector<128x64xf32>
    %c0_9 = arith.constant 0 : index
    %c0_10 = arith.constant 0 : index
    %11 = vector.load %arg5[%c0_9, %c0_10] : memref<1x64xf32, #tpu.memory_space<vmem>>, vector<1x64xf32>
    %12 = vector.broadcast %11 : vector<1x64xf32> to vector<128x64xf32>
    %13 = arith.addf %10, %12 : vector<128x64xf32>
    %cst_11 = arith.constant 0.000000e+00 : f32
    %14 = vector.broadcast %cst_11 : f32 to vector<128x64xf32>
    %15 = arith.maximumf %13, %14 : vector<128x64xf32>
    %16 = arith.truncf %15 : vector<128x64xf32> to vector<128x64xbf16>
    %c0_12 = arith.constant 0 : index
    %c0_13 = arith.constant 0 : index
    %17 = vector.load %arg6[%c0_12, %c0_13] : memref<64x128xbf16, #tpu.memory_space<vmem>>, vector<64x128xbf16>
    %cst_14 = arith.constant dense<0.000000e+00> : vector<128x128xf32>
    %18 = tpu.matmul %16, %17, %cst_14 {dimension_numbers = #tpu.dot_dimension_numbers<[1], [0], [0], [1], [0, 0, 1, 1], [], []>} : vector<128x64xbf16>, vector<64x128xbf16>, vector<128x128xf32> -> vector<128x128xf32>
    %c0_15 = arith.constant 0 : index
    %c0_16 = arith.constant 0 : index
    %19 = vector.load %arg7[%c0_15, %c0_16] : memref<1x128xf32, #tpu.memory_space<vmem>>, vector<1x128xf32>
    %20 = vector.broadcast %19 : vector<1x128xf32> to vector<128x128xf32>
    %21 = arith.addf %18, %20 : vector<128x128xf32>
    %cst_17 = arith.constant dense<0xFF800000> : vector<128xf32>
    %22 = vector.multi_reduction <maximumf>, %21, %cst_17 [1] : vector<128x128xf32> to vector<128xf32>
    %23 = vector.shape_cast %22 : vector<128xf32> to vector<128x1xf32>
    %24 = vector.broadcast %23 : vector<128x1xf32> to vector<128x128xf32>
    %25 = arith.subf %21, %24 : vector<128x128xf32>
    %26 = math.exp %25 : vector<128x128xf32>
    %cst_18 = arith.constant dense<0.000000e+00> : vector<128xf32>
    %27 = vector.multi_reduction <add>, %26, %cst_18 [1] : vector<128x128xf32> to vector<128xf32>
    %28 = vector.shape_cast %27 : vector<128xf32> to vector<128x1xf32>
    %29 = tpu.reciprocal %28 {approx = true} : vector<128x1xf32> -> vector<128x1xf32>
    %30 = arith.mulf %28, %29 : vector<128x1xf32>
    %cst_19 = arith.constant 2.000000e+00 : f32
    %31 = vector.broadcast %cst_19 : f32 to vector<128x1xf32>
    %32 = arith.subf %31, %30 : vector<128x1xf32>
    %33 = arith.mulf %29, %32 : vector<128x1xf32>
    %34 = vector.extract_strided_slice %26 {offsets = [0, 0], sizes = [128, 8], strides = [1, 1]} : vector<128x128xf32> to vector<128x8xf32>
    %35 = vector.broadcast %33 : vector<128x1xf32> to vector<128x8xf32>
    %36 = arith.mulf %34, %35 : vector<128x8xf32>
    %c0_20 = arith.constant 0 : index
    %c0_21 = arith.constant 0 : index
    %37 = vector.load %arg8[%c0_20, %c0_21] : memref<128x8xf32, #tpu.memory_space<vmem>>, vector<128x8xf32>
    tpu.vector_store %arg8[%c0_20, %c0_21], %36 {strides = array<i32>} : memref<128x8xf32, #tpu.memory_space<vmem>>, vector<128x8xf32>,
    return
  }
  func.func @transform_0(%arg0: i32) -> (i32, i32) {
    %c0_i32 = arith.constant 0 : i32
    %c0_i32_0 = arith.constant 0 : i32
    return %arg0, %c0_i32 : i32, i32
  }
  func.func @transform_1(%arg0: i32) -> (i32, i32) {
    %c0_i32 = arith.constant 0 : i32
    %c0_i32_0 = arith.constant 0 : i32
    %c0_i32_1 = arith.constant 0 : i32
    return %c0_i32, %c0_i32_0 : i32, i32
  }
  func.func @transform_2(%arg0: i32) -> (i32, i32) {
    %c0_i32 = arith.constant 0 : i32
    %c0_i32_0 = arith.constant 0 : i32
    %c0_i32_1 = arith.constant 0 : i32
    return %c0_i32, %c0_i32_0 : i32, i32
  }
  func.func @transform_3(%arg0: i32) -> (i32, i32) {
    %c0_i32 = arith.constant 0 : i32
    %c0_i32_0 = arith.constant 0 : i32
    %c0_i32_1 = arith.constant 0 : i32
    return %c0_i32, %c0_i32_0 : i32, i32
  }
  func.func @transform_4(%arg0: i32) -> (i32, i32) {
    %c0_i32 = arith.constant 0 : i32
    %c0_i32_0 = arith.constant 0 : i32
    %c0_i32_1 = arith.constant 0 : i32
    return %c0_i32, %c0_i32_0 : i32, i32
  }
  func.func @transform_5(%arg0: i32) -> (i32, i32) {
    %c0_i32 = arith.constant 0 : i32
    %c0_i32_0 = arith.constant 0 : i32
    %c0_i32_1 = arith.constant 0 : i32
    return %c0_i32, %c0_i32_0 : i32, i32
  }
  func.func @transform_6(%arg0: i32) -> (i32, i32) {
    %c0_i32 = arith.constant 0 : i32
    %c0_i32_0 = arith.constant 0 : i32
    %c0_i32_1 = arith.constant 0 : i32
    return %c0_i32, %c0_i32_0 : i32, i32
  }
  func.func @transform_7(%arg0: i32) -> (i32, i32) {
    %c0_i32 = arith.constant 0 : i32
    %c0_i32_0 = arith.constant 0 : i32
    return %arg0, %c0_i32 : i32, i32
  }
}

</mosaic_0001>

<bundles_post_ra>
// kernel: actor_softmax_forward.1
= control target key start
LH: loop header
LB: loop body
LE: loop exit
PB: predicated region body
PF: predicated region fallthrough
CT: control target
= control target key end

     0   :  { %s1418_s24 = smov 0   ;;  %s1632_s0 = inlined_call_operand.vmem [shape: bf16[256,32], index: 0, kind: input, shape index: {}]   ;;  %s1633_s1 = inlined_call_operand.vmem [shape: bf16[32,64], index: 1, kind: input, shape index: {}]   ;;  %s1634_s2 = inlined_call_operand.vmem [shape: f32[1,64], index: 2, kind: input, shape index: {}]   ;;  %s1635_s3 = inlined_call_operand.vmem [shape: bf16[64,64], index: 3, kind: input, shape index: {}]   ;;  %s1636_s4 = inlined_call_operand.vmem [shape: f32[1,64], index: 4, kind: input, shape index: {}]   ;;  %s1637_s5 = inlined_call_operand.vmem [shape: bf16[64,128], index: 5, kind: input, shape index: {}]   ;;  %s1638_s6 = inlined_call_operand.vmem [shape: f32[1,128], index: 6, kind: input, shape index: {}]   ;;  %s1639_s7 = inlined_call_operand.vmem [shape: f32[256,8], index: 7, kind: output, shape index: {}]  }
   0x1 LB: > { %s1118_s25 = sadd.s32 4294967295, %s1376_s24   ;;  %p1122_p0 = scmp.ge.s32.totalorder %s1376_s24, 1  ;;  %s1376_s24 = sphi %s1418_s24, %s17_s24  }
   0x2   : > { %p238_p1 = scmp.lt.s32.totalorder %s1376_s24, 3 }
   0x4   : > { %p239_p2 = pnand %p1122_p0, %p238_p1 }
   0x5   : > { %v1288_v0 = vld [vmem:[%s1633_s1] sm:$0xff] (!%p239_p2)   ;;  %s1123_s28 = sshll.u32 (!%p239_p2), %s1118_s25, 4  ;;  %v1289_v1 = vld [vmem:[%s1633_s1 + $0x8] sm:$0xff] (!%p239_p2)   ;;  %vm362_vm0 = vcmask (!%p239_p2), 261120   ;;  %v1300_v12 = vld [vmem:[%s1635_s3 + $0x10] sm:$0xff] (!%p239_p2)   ;;  %vm547_vm1 = vcmask (!%p239_p2), 523264  }
   0x6   : > { %242 = sbr.rel (%p239_p2) target bundleno = 1027 (0x403), region = 48  ;;  %p271_p3 = scmp.lt.s32.totalorder (!%p239_p2), %s1123_s28, 31  ;;  %1208 = vmatprep.subr.bf16.mxu0 (!%p239_p2), %v1288_v0  ;;  %1276 = vmatprep.subr.bf16.mxu1 (!%p239_p2), %v1288_v0  ;;  %v1298_v2 = vld [vmem:[%s1635_s3] sm:$0xff] (!%p239_p2)   ;;  %v1299_v6 = vld [vmem:[%s1635_s3 + $0x8] sm:$0xff] (!%p239_p2)   ;;  %v1301_v13 = vld [vmem:[%s1635_s3 + $0x18] sm:$0xff] (!%p239_p2)   ;;  %vm1045_vm2 = vcmask (!%p239_p2), 64512  }
   0x7   : > { %1209 = vmatpush3.bf16.msra.mxu0 (!%p239_p2), %v1288_v0  ;;  %1278 = vmatpush3.bf16.msra.mxu1 (!%p239_p2), %v1288_v0  ;;  %v1302_v14 = vld [vmem:[%s1637_s5] sm:$0xff] (!%p239_p2)   ;;  %v1303_v15 = vld [vmem:[%s1637_s5 + $0x8] sm:$0xff] (!%p239_p2)  }
   0x8   : > { %1210 = vmatprep.subr.bf16.mxu0 (!%p239_p2), %v1289_v1  ;;  %1277 = vmatprep.subr.bf16.mxu1 (!%p239_p2), %v1289_v1  ;;  %v1127_v16 = vld [vmem:[%s1634_s2] ss:$0 sm:$0xff] (!%p239_p2) }
   0xb   : > { %1211 = vmatpush3.bf16.msra.mxu0 (!%p239_p2), %v1289_v1  ;;  %1279 = vmatpush3.bf16.msra.mxu1 (!%p239_p2), %v1289_v1 }
   0xc   : > { %1228 = vmatprep.subr.bf16.mxu1 (!%p239_p2), %v1298_v2  ;;  %1252 = vmatprep.subr.bf16.mxu0 (!%p239_p2), %v1302_v14 }
   0xd   : > { %s1641_s28 = smov (!%p271_p3, %s1123_s28), 31 }
   0xe   : > { %s1124_s10 = sshll.u32 %s1641_s28, 2 }
   0xf   : > { %s274_s13 = scalar_lea.vmem %s1632_s0, %s1124_s10 }
  0x10   : > { %v1290_v3 = vld [vmem:[%s274_s13] sm:$0xff]   ;;  %v1291_v4 = vld [vmem:[%s274_s13 + $0x8] sm:$0xff]   ;;  %v1292_v5 = vld [vmem:[%s274_s13 + $0x10] sm:$0xff]  }
  0x11   : > { %1212 = vmatprep.mubr.msk.bf16.mxu0 %vm362_vm0, %v1290_v3  ;;  %v1294_v7 = vld [vmem:[%s274_s13 + $0x20] sm:$0xff]   ;;  %v1295_v8 = vld [vmem:[%s274_s13 + $0x28] sm:$0xff]   ;;  %v1296_v9 = vld [vmem:[%s274_s13 + $0x30] sm:$0xff]  }
  0x12   : > { %1213 = vmatmul.mubr.msk.bf16.vlgmr.msra.gmra.mrb[0].mxu0 %vm362_vm0, %v1291_v4  ;;  %1220 = vmatprep.mubr.msk.bf16.mxu1 %vm362_vm0, %v1294_v7  ;;  %v1293_v10 = vld [vmem:[%s274_s13 + $0x18] sm:$0xff]  }
  0x13   : > { %1216 = vmatprep.mubr.msk.bf16.mxu0 %vm362_vm0, %v1292_v5  ;;  %1221 = vmatmul.mubr.msk.bf16.vlgmr.msra.gmra.mrb[0].mxu1 %vm362_vm0, %v1295_v8  ;;  %v1297_v11 = vld [vmem:[%s274_s13 + $0x38] sm:$0xff]   ;;  %s1126_s13 = sshll.u32 %s1641_s28, 3 }
  0x14   : > { %1224 = vmatprep.mubr.msk.bf16.mxu1 %vm362_vm0, %v1296_v9  ;;  %1229 = vmatpush3.bf16.msra.mxu1 %v1298_v2  ;;  %v1304_v9 = vld [vmem:[%s1637_s5 + $0x10] sm:$0xff]   ;;  %s1579_s16 = scalar_lea.vmem %s1639_s7, %s1126_s13 }
  0x15   : > { %1230 = vmatprep.subr.bf16.mxu1 %v1299_v6  ;;  %1253 = vmatpush3.bf16.msra.mxu0 %v1302_v14 }
  0x16   : > { %1254 = vmatprep.subr.bf16.mxu0 %v1303_v15 }
  0x18   : > { %1231 = vmatpush3.bf16.msra.mxu1 %v1299_v6 }
  0x19   : > { %1232 = vmatprep.subr.bf16.mxu1 %v1300_v12  ;;  %1255 = vmatpush3.bf16.msra.mxu0 %v1303_v15 }
  0x1a   : > { %1217 = vmatmul.mubr.msk.bf16.gmra.mrb[4].mxu0 %vm362_vm0, %v1293_v10  ;;  %1256 = vmatprep.subr.bf16.mxu0 %v1304_v9  ;;  %v1305_v10 = vld [vmem:[%s1637_s5 + $0x18] sm:$0xff]  }
  0x1b   : > { %1225 = vmatmul.mubr.msk.bf16.gmra.mrb[4].mxu1 %vm362_vm0, %v1297_v11  ;;  %v1146_v11 = vld [vmem:[%s1636_s4] ss:$0 sm:$0xff] }
  0x1c   : > { %1233 = vmatpush3.bf16.msra.mxu1 %v1300_v12 }
  0x1d   : > { %1234 = vmatprep.subr.bf16.mxu1 %v1301_v13  ;;  %1257 = vmatpush3.bf16.msra.mxu0 %v1304_v9 }
  0x1e   : > { %1258 = vmatprep.subr.bf16.mxu0 %v1305_v10 }
  0x20   : > { %1235 = vmatpush3.bf16.msra.mxu1 %v1301_v13 }
  0x21   : > { %1259 = vmatpush3.bf16.msra.mxu0 %v1305_v10 }
  0xe5   : > { %v1214_v17 = vpop.f32.mrb[0].mxu0 }
  0xe6   : > { %v430_v18 = vadd.f32 %v1214_v17, %v1127_v16  ;;  %v421_v19 = vpop.f32.mrb[1].mxu0  ;;  %v1222_v25 = vpop.f32.mrb[0].mxu1 }
  0xe7   : > { %v422_v20 = vadd.f32 %v1127_v16, %v421_v19  ;;  %v1215_v21 = vpop.f32.mrb[2].mxu0  ;;  %v462_v28 = vadd.f32 %v1222_v25, %v1127_v16  ;;  %v453_v29 = vpop.f32.mrb[1].mxu1 }
  0xe8   : > { %v433_v22 = vadd.f32 %v1215_v21, %v1127_v16  ;;  %v424_v23 = vpop.f32.mrb[3].mxu0  ;;  %v486_v26 = vmax.f32 %v430_v18, 0.0  ;;  %v454_v32 = vadd.f32 %v1127_v16, %v453_v29  ;;  %v1223_v33 = vpop.f32.mrb[2].mxu1 }
  0xe9   : > { %v425_v24 = vadd.f32 %v1127_v16, %v424_v23  ;;  %v484_v30 = vmax.f32 %v422_v20, 0.0  ;;  %v494_v35 = vmax.f32 %v462_v28, 0.0  ;;  %v465_v36 = vadd.f32 %v1223_v33, %v1127_v16  ;;  %v456_v37 = vpop.f32.mrb[3].mxu1 }
  0xea   : > { %v487_v27 = vmax.f32 %v433_v22, 0.0  ;;  %v492_v40 = vmax.f32 %v454_v32, 0.0  ;;  %v457_v41 = vadd.f32 %v1127_v16, %v456_v37 }
  0xeb   : > { %v485_v31 = vmax.f32 %v425_v24, 0.0  ;;  %v495_v44 = vmax.f32 %v465_v36, 0.0 }
  0xec   : > { %v501_v34 = vpack.c.bf16 %v487_v27, %v486_v26  ;;  %v493_v47 = vmax.f32 %v457_v41, 0.0 }
  0xed   : > { %v500_v38 = vpack.c.bf16 %v485_v31, %v484_v30  ;;  %v1218_v39 = vpop.f32.mrb[4].mxu0  ;;  %v505_v51 = vpack.c.bf16 %v495_v44, %v494_v35 }
  0xee   : > { %v446_v42 = vadd.f32 %v1218_v39, %v1127_v16  ;;  %v437_v43 = vpop.f32.mrb[5].mxu0  ;;  %v504_v53 = vpack.c.bf16 %v493_v47, %v492_v40  ;;  %v1226_v54 = vpop.f32.mrb[4].mxu1 }
  0xef   : > { %v438_v45 = vadd.f32 %v1127_v16, %v437_v43  ;;  %v1219_v46 = vpop.f32.mrb[6].mxu0  ;;  %1236 = vmatprep.mubr.msk.bf16.mxu1 %vm547_vm1, %v500_v38  ;;  %v478_v56 = vadd.f32 %v1226_v54, %v1127_v16  ;;  %v469_v57 = vpop.f32.mrb[5].mxu1 }
  0xf0   : > { %v490_v48 = vmax.f32 %v446_v42, 0.0  ;;  %v449_v49 = vadd.f32 %v1219_v46, %v1127_v16  ;;  %v440_v50 = vpop.f32.mrb[7].mxu0  ;;  %1237 = vmatmul.mubr.msk.bf16.vlgmr.msra.gmra.mrb[8].mxu1 %vm547_vm1, %v501_v34  ;;  %v470_v60 = vadd.f32 %v1127_v16, %v469_v57  ;;  %v1227_v61 = vpop.f32.mrb[6].mxu1 }
  0xf1   : > { %v441_v52 = vadd.f32 %v1127_v16, %v440_v50  ;;  %v488_v58 = vmax.f32 %v438_v45, 0.0  ;;  %v498_v63 = vmax.f32 %v478_v56, 0.0  ;;  %v481_v0 = vadd.f32 %v1227_v61, %v1127_v16  ;;  %v472_v1 = vpop.f32.mrb[7].mxu1 }
  0xf2   : > { %v491_v55 = vmax.f32 %v449_v49, 0.0  ;;  %v496_v3 = vmax.f32 %v470_v60, 0.0  ;;  %v473_v4 = vadd.f32 %v1127_v16, %v472_v1 }
  0xf3   : > { %v489_v59 = vmax.f32 %v441_v52, 0.0  ;;  %v499_v5 = vmax.f32 %v481_v0, 0.0 }
  0xf4   : > { %v503_v62 = vpack.c.bf16 %v491_v55, %v490_v48  ;;  %v497_v6 = vmax.f32 %v473_v4, 0.0  ;;  %v1159_v4 = vld [vmem:[%s1638_s6] ss:$0 sm:$0xff] }
  0xf5   : > { %v502_v2 = vpack.c.bf16 %v489_v59, %v488_v58  ;;  %v507_v7 = vpack.c.bf16 %v499_v5, %v498_v63 }
  0xf6   : > { %v506_v8 = vpack.c.bf16 %v497_v6, %v496_v3 }
  0xf7   : > { %1240 = vmatprep.mubr.msk.bf16.mxu1 %vm547_vm1, %v502_v2 }
  0xf8   : > { %1241 = vmatmul.mubr.msk.bf16.gmra.mrb[12].mxu1 %vm547_vm1, %v503_v62 }
  0xf9   : > { %1244 = vmatprep.mubr.msk.bf16.mxu1 %vm547_vm1, %v504_v53 }
 0x100   : > { %1245 = vmatmul.mubr.msk.bf16.gmra.mrb[16].mxu1 %vm547_vm1, %v505_v51 }
 0x101   : > { %1248 = vmatprep.mubr.msk.bf16.mxu1 %vm547_vm1, %v506_v8 }
 0x108   : > { %1249 = vmatmul.mubr.msk.bf16.gmra.mrb[20].mxu1 %vm547_vm1, %v507_v7 }
 0x1c3   : > { %v1238_v12 = vpop.f32.mrb[8].mxu1 }
 0x1c4   : > { %v615_v13 = vadd.f32 %v1238_v12, %v1146_v11  ;;  %v606_v14 = vpop.f32.mrb[9].mxu1 }
 0x1c5   : > { %v607_v15 = vadd.f32 %v1146_v11, %v606_v14  ;;  %v1239_v16 = vpop.f32.mrb[10].mxu1 }
 0x1c6   : > { %v618_v17 = vadd.f32 %v1239_v16, %v1146_v11  ;;  %v609_v18 = vpop.f32.mrb[11].mxu1  ;;  %v671_v20 = vmax.f32 %v615_v13, 0.0 }
 0x1c7   : > { %v610_v19 = vadd.f32 %v1146_v11, %v609_v18  ;;  %v669_v22 = vmax.f32 %v607_v15, 0.0 }
 0x1c8   : > { %v672_v21 = vmax.f32 %v618_v17, 0.0 }
 0x1c9   : > { %v670_v23 = vmax.f32 %v610_v19, 0.0 }
 0x1ca   : > { %v686_v24 = vpack.c.bf16 %v672_v21, %v671_v20 }
 0x1cb   : > { %v685_v25 = vpack.c.bf16 %v670_v23, %v669_v22  ;;  %v1242_v26 = vpop.f32.mrb[12].mxu1 }
 0x1cc   : > { %v631_v27 = vadd.f32 %v1242_v26, %v1146_v11  ;;  %v622_v28 = vpop.f32.mrb[13].mxu1 }
 0x1cd   : > { %v623_v29 = vadd.f32 %v1146_v11, %v622_v28  ;;  %v1243_v30 = vpop.f32.mrb[14].mxu1  ;;  %1260 = vmatprep.mubr.msk.bf16.mxu0 %vm547_vm1, %v685_v25 }
 0x1ce   : > { %v634_v31 = vadd.f32 %v1243_v30, %v1146_v11  ;;  %v625_v32 = vpop.f32.mrb[15].mxu1  ;;  %1261 = vmatmul.mubr.msk.bf16.vlgmr.msra.gmra.mrb[8].mxu0 %vm547_vm1, %v686_v24  ;;  %v675_v34 = vmax.f32 %v631_v27, 0.0 }
 0x1cf   : > { %v626_v33 = vadd.f32 %v1146_v11, %v625_v32  ;;  %v673_v36 = vmax.f32 %v623_v29, 0.0 }
 0x1d0   : > { %v676_v35 = vmax.f32 %v634_v31, 0.0 }
 0x1d1   : > { %v674_v37 = vmax.f32 %v626_v33, 0.0 }
 0x1d2   : > { %v688_v38 = vpack.c.bf16 %v676_v35, %v675_v34 }
 0x1d3   : > { %v687_v39 = vpack.c.bf16 %v674_v37, %v673_v36  ;;  %v1246_v40 = vpop.f32.mrb[16].mxu1 }
 0x1d4   : > { %v647_v41 = vadd.f32 %v1246_v40, %v1146_v11  ;;  %v638_v42 = vpop.f32.mrb[17].mxu1 }
 0x1d5   : > { %v639_v43 = vadd.f32 %v1146_v11, %v638_v42  ;;  %v1247_v44 = vpop.f32.mrb[18].mxu1  ;;  %1264 = vmatprep.mubr.msk.bf16.mxu0 %vm547_vm1, %v687_v39 }
 0x1d6   : > { %v650_v45 = vadd.f32 %v1247_v44, %v1146_v11  ;;  %v641_v46 = vpop.f32.mrb[19].mxu1  ;;  %1265 = vmatmul.mubr.msk.bf16.gmra.mrb[12].mxu0 %vm547_vm1, %v688_v38  ;;  %v679_v48 = vmax.f32 %v647_v41, 0.0 }
 0x1d7   : > { %v642_v47 = vadd.f32 %v1146_v11, %v641_v46  ;;  %v677_v50 = vmax.f32 %v639_v43, 0.0 }
 0x1d8   : > { %v680_v49 = vmax.f32 %v650_v45, 0.0 }
 0x1d9   : > { %v678_v51 = vmax.f32 %v642_v47, 0.0 }
 0x1da   : > { %v690_v52 = vpack.c.bf16 %v680_v49, %v679_v48 }
 0x1db   : > { %v689_v53 = vpack.c.bf16 %v678_v51, %v677_v50  ;;  %v1250_v54 = vpop.f32.mrb[20].mxu1 }
 0x1dc   : > { %v663_v55 = vadd.f32 %v1250_v54, %v1146_v11  ;;  %v654_v56 = vpop.f32.mrb[21].mxu1 }
 0x1dd   : > { %v655_v57 = vadd.f32 %v1146_v11, %v654_v56  ;;  %v1251_v58 = vpop.f32.mrb[22].mxu1  ;;  %1268 = vmatprep.mubr.msk.bf16.mxu0 %vm547_vm1, %v689_v53 }
 0x1de   : > { %v666_v59 = vadd.f32 %v1251_v58, %v1146_v11  ;;  %v657_v60 = vpop.f32.mrb[23].mxu1  ;;  %1269 = vmatmul.mubr.msk.bf16.gmra.mrb[16].mxu0 %vm547_vm1, %v690_v52  ;;  %v683_v62 = vmax.f32 %v663_v55, 0.0 }
 0x1df   : > { %v658_v61 = vadd.f32 %v1146_v11, %v657_v60  ;;  %v681_v0 = vmax.f32 %v655_v57, 0.0 }
 0x1e0   : > { %v684_v63 = vmax.f32 %v666_v59, 0.0 }
 0x1e1   : > { %v682_v1 = vmax.f32 %v658_v61, 0.0 }
 0x1e2   : > { %v692_v2 = vpack.c.bf16 %v684_v63, %v683_v62 }
 0x1e3   : > { %v691_v3 = vpack.c.bf16 %v682_v1, %v681_v0 }
 0x1e5   : > { %1272 = vmatprep.mubr.msk.bf16.mxu0 %vm547_vm1, %v691_v3 }
 0x1e6   : > { %1273 = vmatmul.mubr.msk.bf16.gmra.mrb[20].mxu0 %vm547_vm1, %v692_v2 }
 0x2a1   : > { %v1262_v5 = vpop.f32.mrb[8].mxu0 }
 0x2a2   : > { %v799_v6 = vadd.f32 %v1262_v5, %v1159_v4  ;;  %v790_v7 = vpop.f32.mrb[9].mxu0 }
 0x2a3   : > { %v791_v8 = vadd.f32 %v1159_v4, %v790_v7  ;;  %v1263_v9 = vpop.f32.mrb[10].mxu0 }
 0x2a4   : > { %857 = vmax.xlane.f32.xlu1 %v799_v6  ;;  %v793_v10 = vpop.f32.mrb[11].mxu0  ;;  %v802_v11 = vadd.f32 %v1263_v9, %v1159_v4 }
 0x2a5   : > { %853 = vmax.xlane.f32.xlu0 %v791_v8  ;;  %v794_v12 = vadd.f32 %v1159_v4, %v793_v10 }
 0x2a8   : > { %859 = vmax.xlane.f32.xlu1 %v802_v11 }
 0x2a9   : > { %v1266_v13 = vpop.f32.mrb[12].mxu0  ;;  %855 = vmax.xlane.f32.xlu0 %v794_v12 }
 0x2aa   : > { %v815_v14 = vadd.f32 %v1266_v13, %v1159_v4  ;;  %v806_v15 = vpop.f32.mrb[13].mxu0 }
 0x2ab   : > { %v1267_v16 = vpop.f32.mrb[14].mxu0  ;;  %v807_v19 = vadd.f32 %v1159_v4, %v806_v15 }
 0x2ac   : > { %v818_v17 = vadd.f32 %v1267_v16, %v1159_v4  ;;  %v809_v18 = vpop.f32.mrb[15].mxu0 }
 0x2ad   : > { %865 = vmax.xlane.f32.xlu0 %v815_v14  ;;  %v810_v20 = vadd.f32 %v1159_v4, %v809_v18 }
 0x2ae   : > { %867 = vmax.xlane.f32.xlu1 %v818_v17 }
 0x2b1   : > { %v1270_v21 = vpop.f32.mrb[16].mxu0  ;;  %861 = vmax.xlane.f32.xlu0 %v807_v19 }
 0x2b2   : > { %v1495_v22 = vadd.f32 %v1270_v21, %v1159_v4  ;;  %v822_v23 = vpop.f32.mrb[17].mxu0  ;;  %863 = vmax.xlane.f32.xlu1 %v810_v20 }
 0x2b3   : > { %v1271_v24 = vpop.f32.mrb[18].mxu0  ;;  %v1501_v27 = vadd.f32 %v1159_v4, %v822_v23 }
 0x2b4   : > { %v1497_v25 = vadd.f32 %v1271_v24, %v1159_v4  ;;  %v825_v26 = vpop.f32.mrb[19].mxu0 }
 0x2b5   : > { %873 = vmax.xlane.f32.xlu0 %v1495_v22  ;;  %v1503_v28 = vadd.f32 %v1159_v4, %v825_v26 }
 0x2b6   : > { %875 = vmax.xlane.f32.xlu1 %v1497_v25 }
 0x2b9   : > { %v1274_v29 = vpop.f32.mrb[20].mxu0  ;;  %869 = vmax.xlane.f32.xlu0 %v1501_v27 }
 0x2ba   : > { %v838_v30 = vpop.f32.mrb[21].mxu0  ;;  %871 = vmax.xlane.f32.xlu1 %v1503_v28  ;;  %v1512_v35 = vadd.f32 %v1274_v29, %v1159_v4 }
 0x2bb   : > { %v1507_v31 = vadd.f32 %v1159_v4, %v838_v30  ;;  %v1275_v32 = vpop.f32.mrb[22].mxu0 }
 0x2bc   : > { %v841_v33 = vpop.f32.mrb[23].mxu0  ;;  %v1515_v36 = vadd.f32 %v1275_v32, %v1159_v4 }
 0x2bd   : > { %v1509_v34 = vadd.f32 %v1159_v4, %v841_v33  ;;  %877 = vmax.xlane.f32.xlu0 %v1507_v31 }
 0x2bf   : > { %879 = vmax.xlane.f32.xlu1 %v1509_v34 }
 0x2c1   : > { %881 = vmax.xlane.f32.xlu0 %v1512_v35 }
 0x2c3   : > { %883 = vmax.xlane.f32.xlu1 %v1515_v36 }
 0x331   : > { %v858_v37 = vpop.xlane.xlu1 %857 }
 0x332   : > { %v887_v38 = vsub.f32 %v799_v6, %v858_v37  ;;  %v854_v39 = vpop.xlane.xlu0 %853 }
 0x333   : > { %v885_v40 = vsub.f32 %v791_v8, %v854_v39 }
 0x334   : > { %v905_v41 = vmul.f32 1.442695, %v887_v38 }
 0x335   : > { %v901_v42 = vmul.f32 1.442695, %v885_v40  ;;  %v860_v43 = vpop.xlane.xlu1 %859 }
 0x336   : > { %1306 = vpow2.f32 %v905_v41  ;;  %v888_v44 = vsub.f32 %v802_v11, %v860_v43  ;;  %v856_v45 = vpop.xlane.xlu0 %855 }
 0x337   : > { %v886_v46 = vsub.f32 %v794_v12, %v856_v45  ;;  %1308 = vpow2.f32 %v901_v42 }
 0x338   : > { %v907_v47 = vmul.f32 1.442695, %v888_v44 }
 0x339   : > { %v903_v48 = vmul.f32 1.442695, %v886_v46 }
 0x33a   : > { %1310 = vpow2.f32 %v907_v47  ;;  %v866_v49 = vpop.xlane.xlu0 %865 }
 0x33b   : > { %v891_v50 = vsub.f32 %v815_v14, %v866_v49  ;;  %v868_v51 = vpop.xlane.xlu1 %867  ;;  %1312 = vpow2.f32 %v903_v48 }
 0x33c   : > { %v892_v52 = vsub.f32 %v818_v17, %v868_v51 }
 0x33d   : > { %v913_v53 = vmul.f32 1.442695, %v891_v50 }
 0x33e   : > { %v915_v54 = vmul.f32 1.442695, %v892_v52  ;;  %v862_v55 = vpop.xlane.xlu0 %861 }
 0x33f   : > { %1314 = vpow2.f32 %v913_v53  ;;  %v889_v56 = vsub.f32 %v807_v19, %v862_v55  ;;  %v864_v57 = vpop.xlane.xlu1 %863 }
 0x340   : > { %v1519_v58 = vpop.eup %1306  ;;  %v890_v59 = vsub.f32 %v810_v20, %v864_v57  ;;  %1316 = vpow2.f32 %v915_v54 }
 0x341   : > { %v909_v60 = vmul.f32 1.442695, %v889_v56  ;;  %937 = vadd.xlane.f32.xlu0 %v1519_v58  ;;  %v1522_v63 = vpop.eup %1308 }
 0x342   : > { %v911_v61 = vmul.f32 1.442695, %v890_v59  ;;  %v874_v62 = vpop.xlane.xlu0 %873 }
 0x343   : > { %1318 = vpow2.f32 %v909_v60  ;;  %v895_v0 = vsub.f32 %v1495_v22, %v874_v62  ;;  %v876_v1 = vpop.xlane.xlu1 %875 }
 0x344   : > { %v1525_v2 = vpop.eup %1310  ;;  %v896_v3 = vsub.f32 %v1497_v25, %v876_v1  ;;  %1320 = vpow2.f32 %v911_v61 }
 0x345   : > { %v921_v4 = vmul.f32 1.442695, %v895_v0  ;;  %939 = vadd.xlane.f32.xlu1 %v1525_v2  ;;  %933 = vadd.xlane.f32.xlu0 %v1522_v63  ;;  %v1531_v9 = vpop.eup %1312 }
 0x346   : > { %v923_v5 = vmul.f32 1.442695, %v896_v3  ;;  %v870_v6 = vpop.xlane.xlu0 %869 }
 0x347   : > { %1322 = vpow2.f32 %v921_v4  ;;  %v893_v7 = vsub.f32 %v1501_v27, %v870_v6  ;;  %v872_v8 = vpop.xlane.xlu1 %871 }
 0x348   : > { %v894_v10 = vsub.f32 %v1503_v28, %v872_v8  ;;  %1324 = vpow2.f32 %v923_v5 }
 0x349   : > { %v1534_v11 = vpop.eup %1314  ;;  %v917_v12 = vmul.f32 1.442695, %v893_v7  ;;  %935 = vadd.xlane.f32.xlu1 %v1531_v9 }
 0x34a   : > { %v919_v13 = vmul.f32 1.442695, %v894_v10  ;;  %945 = vadd.xlane.f32.xlu0 %v1534_v11  ;;  %v878_v14 = vpop.xlane.xlu0 %877  ;;  %v1539_v16 = vpop.eup %1316 }
 0x34b   : > { %1326 = vpow2.f32 %v917_v12  ;;  %v897_v15 = vsub.f32 %v1507_v31, %v878_v14 }
 0x34c   : > { %v880_v17 = vpop.xlane.xlu1 %879  ;;  %1328 = vpow2.f32 %v919_v13 }
 0x34d   : > { %v1541_v18 = vpop.eup %1318  ;;  %v925_v19 = vmul.f32 1.442695, %v897_v15  ;;  %v898_v20 = vsub.f32 %v1509_v34, %v880_v17  ;;  %947 = vadd.xlane.f32.xlu1 %v1539_v16 }
 0x34e   : > { %941 = vadd.xlane.f32.xlu0 %v1541_v18  ;;  %v882_v21 = vpop.xlane.xlu0 %881  ;;  %v1547_v24 = vpop.eup %1320 }
 0x34f   : > { %1330 = vpow2.f32 %v925_v19  ;;  %v927_v22 = vmul.f32 1.442695, %v898_v20  ;;  %v899_v23 = vsub.f32 %v1512_v35, %v882_v21 }
 0x350   : > { %v884_v25 = vpop.xlane.xlu1 %883 }
 0x351   : > { %v1549_v26 = vpop.eup %1322  ;;  %1332 = vpow2.f32 %v927_v22  ;;  %v929_v27 = vmul.f32 1.442695, %v899_v23  ;;  %v900_v28 = vsub.f32 %v1515_v36, %v884_v25  ;;  %943 = vadd.xlane.f32.xlu1 %v1547_v24 }
 0x352   : > { %953 = vadd.xlane.f32.xlu0 %v1549_v26  ;;  %v1554_v30 = vpop.eup %1324 }
 0x353   : > { %1334 = vpow2.f32 %v929_v27  ;;  %v931_v29 = vmul.f32 1.442695, %v900_v28 }
 0x355   : > { %v1556_v31 = vpop.eup %1326  ;;  %1336 = vpow2.f32 %v931_v29  ;;  %955 = vadd.xlane.f32.xlu1 %v1554_v30 }
 0x356   : > { %949 = vadd.xlane.f32.xlu0 %v1556_v31  ;;  %v1560_v32 = vpop.eup %1328 }
 0x359   : > { %v1562_v33 = vpop.eup %1330  ;;  %951 = vadd.xlane.f32.xlu1 %v1560_v32 }
 0x35a   : > { %957 = vadd.xlane.f32.xlu0 %v1562_v33 }
 0x35b   : > { %v1566_v34 = vpop.eup %1332 }
 0x35d   : > { %v1568_v35 = vpop.eup %1334  ;;  %959 = vadd.xlane.f32.xlu1 %v1566_v34 }
 0x35e   : > { %961 = vadd.xlane.f32.xlu0 %v1568_v35 }
 0x35f   : > { %v1572_v36 = vpop.eup %1336 }
 0x361   : > { %963 = vadd.xlane.f32.xlu1 %v1572_v36 }
 0x3ce   : > { %v938_v37 = vpop.xlane.xlu0 %937 }
 0x3cf   : > { %1338 = vrcp.f32 %v938_v37 }
 0x3d2   : > { %v940_v38 = vpop.xlane.xlu1 %939  ;;  %v934_v39 = vpop.xlane.xlu0 %933 }
 0x3d3   : > { %1340 = vrcp.f32 %v940_v38 }
 0x3d4   : > { %1342 = vrcp.f32 %v934_v39 }
 0x3d6   : > { %v936_v40 = vpop.xlane.xlu1 %935 }
 0x3d7   : > { %1344 = vrcp.f32 %v936_v40  ;;  %v946_v41 = vpop.xlane.xlu0 %945 }
 0x3d8   : > { %1346 = vrcp.f32 %v946_v41 }
 0x3d9   : > { %v1339_v42 = vpop.eup %1338 }
 0x3da   : > { %v983_v43 = vmul.f32 %v1339_v42, %v938_v37  ;;  %v948_v44 = vpop.xlane.xlu1 %947 }
 0x3db   : > { %1348 = vrcp.f32 %v948_v44  ;;  %v942_v45 = vpop.xlane.xlu0 %941 }
 0x3dc   : > { %v999_v46 = vsub.f32 2.0, %v983_v43  ;;  %1350 = vrcp.f32 %v942_v45 }
 0x3dd   : > { %v1341_v47 = vpop.eup %1340 }
 0x3de   : > { %v1343_v48 = vpop.eup %1342  ;;  %v1015_v49 = vmul.f32 %v1339_v42, %v999_v46  ;;  %v984_v50 = vmul.f32 %v1341_v47, %v940_v38  ;;  %v944_v51 = vpop.xlane.xlu1 %943 }
 0x3df   : > { %v981_v52 = vmul.f32 %v1343_v48, %v934_v39  ;;  %1352 = vrcp.f32 %v944_v51  ;;  %v954_v53 = vpop.xlane.xlu0 %953 }
 0x3e0   : > { %v1031_v54 = vmul.f32 %v1519_v58, %v1015_v49  ;;  %v1000_v55 = vsub.f32 2.0, %v984_v50  ;;  %1354 = vrcp.f32 %v954_v53 }
 0x3e1   : > { %v1345_v56 = vpop.eup %1344  ;;  %v997_v57 = vsub.f32 2.0, %v981_v52 }
 0x3e2   : > { %v1347_v59 = vpop.eup %1346  ;;  %1048 = vst.msk [vmem:[%s1579_s16 + $0x10] sm:$0xff] %vm1045_vm2, %v1031_v54  ;;  %v1016_v60 = vmul.f32 %v1341_v47, %v1000_v55  ;;  %v982_v61 = vmul.f32 %v1345_v56, %v936_v40  ;;  %v956_v62 = vpop.xlane.xlu1 %955 }
 0x3e3   : > { %v1013_v0 = vmul.f32 %v1343_v48, %v997_v57  ;;  %v987_v1 = vmul.f32 %v1347_v59, %v946_v41  ;;  %1356 = vrcp.f32 %v956_v62  ;;  %v950_v3 = vpop.xlane.xlu0 %949 }
 0x3e4   : > { %v1032_v4 = vmul.f32 %v1525_v2, %v1016_v60  ;;  %v998_v5 = vsub.f32 2.0, %v982_v61  ;;  %1358 = vrcp.f32 %v950_v3 }
 0x3e5   : > { %v1349_v58 = vpop.eup %1348  ;;  %v1029_v6 = vmul.f32 %v1522_v63, %v1013_v0  ;;  %v1003_v7 = vsub.f32 2.0, %v987_v1 }
 0x3e6   : > { %v1351_v8 = vpop.eup %1350  ;;  %1049 = vst.msk [vmem:[%s1579_s16 + $0x18] sm:$0xff] %vm1045_vm2, %v1032_v4  ;;  %v1014_v10 = vmul.f32 %v1345_v56, %v998_v5  ;;  %v988_v12 = vmul.f32 %v1349_v58, %v948_v44  ;;  %v952_v13 = vpop.xlane.xlu1 %951 }
 0x3e7   : > { %1046 = vst.msk [vmem:[%s1579_s16] sm:$0xff] %vm1045_vm2, %v1029_v6  ;;  %v1019_v14 = vmul.f32 %v1347_v59, %v1003_v7  ;;  %v985_v15 = vmul.f32 %v1351_v8, %v942_v45  ;;  %1360 = vrcp.f32 %v952_v13  ;;  %v958_v2 = vpop.xlane.xlu0 %957 }
 0x3e8   : > { %v1030_v17 = vmul.f32 %v1531_v9, %v1014_v10  ;;  %v1004_v19 = vsub.f32 2.0, %v988_v12  ;;  %1362 = vrcp.f32 %v958_v2 }
 0x3e9   : > { %v1353_v63 = vpop.eup %1352  ;;  %v1035_v20 = vmul.f32 %v1534_v11, %v1019_v14  ;;  %v1001_v21 = vsub.f32 2.0, %v985_v15 }
 0x3ea   : > { %v1355_v22 = vpop.eup %1354  ;;  %1047 = vst.msk [vmem:[%s1579_s16 + $0x8] sm:$0xff] %vm1045_vm2, %v1030_v17  ;;  %v1020_v23 = vmul.f32 %v1349_v58, %v1004_v19  ;;  %v986_v25 = vmul.f32 %v1353_v63, %v944_v51  ;;  %v960_v27 = vpop.xlane.xlu1 %959 }
 0x3eb   : > { %1052 = vst.msk [vmem:[%s1579_s16 + $0x30] sm:$0xff] %vm1045_vm2, %v1035_v20  ;;  %v1017_v28 = vmul.f32 %v1351_v8, %v1001_v21  ;;  %v991_v29 = vmul.f32 %v1355_v22, %v954_v53  ;;  %1364 = vrcp.f32 %v960_v27  ;;  %v962_v9 = vpop.xlane.xlu0 %961 }
 0x3ec   : > { %v1036_v37 = vmul.f32 %v1539_v16, %v1020_v23  ;;  %v1002_v38 = vsub.f32 2.0, %v986_v25  ;;  %1366 = vrcp.f32 %v962_v9 }
 0x3ed   : > { %v1357_v11 = vpop.eup %1356  ;;  %v1033_v39 = vmul.f32 %v1541_v18, %v1017_v28  ;;  %v1007_v40 = vsub.f32 2.0, %v991_v29 }
 0x3ee   : > { %v1359_v41 = vpop.eup %1358  ;;  %1053 = vst.msk [vmem:[%s1579_s16 + $0x38] sm:$0xff] %vm1045_vm2, %v1036_v37  ;;  %v1018_v42 = vmul.f32 %v1353_v63, %v1002_v38  ;;  %v992_v43 = vmul.f32 %v1357_v11, %v956_v62  ;;  %v964_v44 = vpop.xlane.xlu1 %963 }
 0x3ef   : > { %1050 = vst.msk [vmem:[%s1579_s16 + $0x20] sm:$0xff] %vm1045_vm2, %v1033_v39  ;;  %v1023_v45 = vmul.f32 %v1355_v22, %v1007_v40  ;;  %v989_v46 = vmul.f32 %v1359_v41, %v950_v3  ;;  %1368 = vrcp.f32 %v964_v44 }
 0x3f0   : > { %v1034_v16 = vmul.f32 %v1547_v24, %v1018_v42  ;;  %v1008_v47 = vsub.f32 2.0, %v992_v43 }
 0x3f1   : > { %v1361_v48 = vpop.eup %1360  ;;  %v1039_v18 = vmul.f32 %v1549_v26, %v1023_v45  ;;  %v1005_v49 = vsub.f32 2.0, %v989_v46 }
 0x3f2   : > { %v1363_v50 = vpop.eup %1362  ;;  %1051 = vst.msk [vmem:[%s1579_s16 + $0x28] sm:$0xff] %vm1045_vm2, %v1034_v16  ;;  %v1024_v51 = vmul.f32 %v1357_v11, %v1008_v47  ;;  %v990_v52 = vmul.f32 %v1361_v48, %v952_v13 }
 0x3f3   : > { %1056 = vst.msk [vmem:[%s1579_s16 + $0x50] sm:$0xff] %vm1045_vm2, %v1039_v18  ;;  %v1021_v53 = vmul.f32 %v1359_v41, %v1005_v49  ;;  %v993_v54 = vmul.f32 %v1363_v50, %v958_v2 }
 0x3f4   : > { %v1040_v55 = vmul.f32 %v1554_v30, %v1024_v51  ;;  %v1006_v56 = vsub.f32 2.0, %v990_v52 }
 0x3f5   : > { %v1365_v24 = vpop.eup %1364  ;;  %v1037_v57 = vmul.f32 %v1556_v31, %v1021_v53  ;;  %v1009_v59 = vsub.f32 2.0, %v993_v54 }
 0x3f6   : > { %v1367_v26 = vpop.eup %1366  ;;  %1057 = vst.msk [vmem:[%s1579_s16 + $0x58] sm:$0xff] %vm1045_vm2, %v1040_v55  ;;  %v1022_v60 = vmul.f32 %v1361_v48, %v1006_v56  ;;  %v994_v61 = vmul.f32 %v1365_v24, %v960_v27 }
 0x3f7   : > { %1054 = vst.msk [vmem:[%s1579_s16 + $0x40] sm:$0xff] %vm1045_vm2, %v1037_v57  ;;  %v1025_v62 = vmul.f32 %v1363_v50, %v1009_v59  ;;  %v995_v0 = vmul.f32 %v1367_v26, %v962_v9 }
 0x3f8   : > { %v1038_v30 = vmul.f32 %v1560_v32, %v1022_v60  ;;  %v1010_v1 = vsub.f32 2.0, %v994_v61 }
 0x3f9   : > { %v1369_v3 = vpop.eup %1368  ;;  %v1041_v31 = vmul.f32 %v1562_v33, %v1025_v62  ;;  %v1011_v4 = vsub.f32 2.0, %v995_v0 }
 0x3fa   : > { %1055 = vst.msk [vmem:[%s1579_s16 + $0x48] sm:$0xff] %vm1045_vm2, %v1038_v30  ;;  %v1026_v5 = vmul.f32 %v1365_v24, %v1010_v1  ;;  %v996_v58 = vmul.f32 %v1369_v3, %v964_v44 }
 0x3fb   : > { %1058 = vst.msk [vmem:[%s1579_s16 + $0x60] sm:$0xff] %vm1045_vm2, %v1041_v31  ;;  %v1027_v6 = vmul.f32 %v1367_v26, %v1011_v4 }
 0x3fc   : > { %v1042_v7 = vmul.f32 %v1566_v34, %v1026_v5  ;;  %v1012_v8 = vsub.f32 2.0, %v996_v58 }
 0x3fd   : > { %v1043_v10 = vmul.f32 %v1568_v35, %v1027_v6 }
 0x3fe   : > { %1059 = vst.msk [vmem:[%s1579_s16 + $0x68] sm:$0xff] %vm1045_vm2, %v1042_v7  ;;  %v1028_v32 = vmul.f32 %v1369_v3, %v1012_v8 }
 0x3ff   : > { %1060 = vst.msk [vmem:[%s1579_s16 + $0x70] sm:$0xff] %vm1045_vm2, %v1043_v10 }
 0x400   : > { %v1044_v33 = vmul.f32 %v1572_v36, %v1028_v32 }
 0x402   : > { %1061 = vst.msk [vmem:[%s1579_s16 + $0x78] sm:$0xff] %vm1045_vm2, %v1044_v33 }
 0x403 PF: > { %s17_s24 = sadd.s32 1, %s1376_s24  }
 0x404   : > { %p14_p4 = scmp.ge.s32.totalorder %s17_s24, 4  }
 0x406   :  { %16 = sbr.rel (!%p14_p4) target bundleno = 1 (0x1), region = 78 }

</bundles_post_ra>
